<compile_context>
chip_gen: v5e
topology: v5e:2x2
jax: 0.10.0
libtpu: 0.0.40
codegen_flags: <defaults>
</compile_context>

<pallas_src>
import functools
import math

import jax
import jax.numpy as jnp
from jax.experimental import pallas as pl
from jax.experimental.pallas import tpu as pltpu


def _round_up(x, m):
    return (x + m - 1) // m * m


def _embed_gather_kernel(ids_ref, table_ref, o_ref, row_buf, sem, *,
                         scale, tokens_per_tile):
    # ids_ref:   (N_pad,) int32 in SMEM  -- scalar-prefetched flattened token ids
    # table_ref: (V, D)   in HBM (pl.ANY) -- rows DMA-gathered on demand
    # o_ref:     (TN, D)  output tile in VMEM
    # row_buf:   (TN, D)  VMEM landing buffer for the gathered rows
    # sem:       single DMA semaphore shared by all row copies of this tile
    base = pl.program_id(0) * tokens_per_tile

    # Issue all row DMAs for this tile so they are in flight concurrently.
    @pl.loop(0, tokens_per_tile)
    def _start(t):
        row = ids_ref[base + t]
        pltpu.make_async_copy(table_ref.at[row], row_buf.at[t], sem).start()

    # Drain: one wait per issued copy (all copies share `sem` and have equal
    # size, so after this loop every row has landed).
    @pl.loop(0, tokens_per_tile)
    def _wait(t):
        pltpu.make_async_copy(table_ref.at[0], row_buf.at[t], sem).wait()

    # sqrt(d_model) scale on the VPU + lane-dense store (D % 128 == 0).
    o_ref[...] = (row_buf[...] * scale).astype(o_ref.dtype)


def input_embeddings(ids, table, *, tokens_per_tile=128):
    """ids: (B, S) integer tokens, table: (V, D) -> (B, S, D) = table[ids]*sqrt(D)."""
    b, s = ids.shape
    v, d = table.shape
    if d % 128 != 0:
        raise ValueError(
            f"d_model must be a multiple of 128 for lane-dense stores (got {d}); "
            "pad the embedding dimension.")
    n = b * s
    scale = math.sqrt(d)  # sqrt(d_model), matching the PyTorch forward

    # nn.Embedding raises on out-of-range ids; we clamp so the row DMA is never
    # out of bounds (silent clamp instead of an error).
    ids_flat = jnp.clip(ids.reshape(-1).astype(jnp.int32), 0, v - 1)

    # Token tile: multiple of 8 (sublane), no bigger than the (rounded) token
    # count; pad the token axis with id 0 so the grid divides exactly.
    tn = _round_up(min(tokens_per_tile, _round_up(n, 8)), 8)
    n_pad = _round_up(n, tn)
    if n_pad != n:
        ids_flat = jnp.pad(ids_flat, (0, n_pad - n))
    num_tiles = n_pad // tn

    kernel = functools.partial(_embed_gather_kernel,
                               scale=scale, tokens_per_tile=tn)

    out = pl.pallas_call(
        kernel,
        out_shape=jax.ShapeDtypeStruct((n_pad, d), table.dtype),
        grid_spec=pltpu.PrefetchScalarGridSpec(
            num_scalar_prefetch=1,          # ids -> SMEM, usable for row DMAs
            grid=(num_tiles,),
            in_specs=[
                # Embedding table stays in HBM; no auto-DMA, no VMEM residency.
                pl.BlockSpec(memory_space=pl.ANY),
            ],
            out_specs=pl.BlockSpec((tn, d), lambda i, ids: (i, 0)),
            scratch_shapes=[
                pltpu.VMEM((tn, d), table.dtype),   # gather landing buffer
                pltpu.SemaphoreType.DMA(()),        # shared DMA semaphore
            ],
        ),
        compiler_params=pltpu.CompilerParams(
            # Independent token tiles: shards across the 2 TensorCores on v7x,
            # no-op on v5e/v6e.
            dimension_semantics=("parallel",)),
    )(ids_flat, table)

    return out[:n].reshape(b, s, d)


if __name__ == "__main__":
    vocab_size, d_model = 512, 128   # D multiple of 128 for lane-dense stores
    batch, seq = 4, 64               # 256 tokens -> 2 grid steps of 128 tokens

    key = jax.random.PRNGKey(0)
    k_emb, k_ids = jax.random.split(key)

    # Deterministic synthetic parameters: nn.Embedding(vocab_size, d_model).weight
    table = jax.random.normal(k_emb, (vocab_size, d_model), dtype=jnp.float32)
    ids = jax.random.randint(k_ids, (batch, seq), 0, vocab_size, dtype=jnp.int32)

    out = input_embeddings(ids, table)
    out = jax.block_until_ready(out)

    # Pure-JAX reference of the PyTorch forward.
    ref = table[ids] * math.sqrt(d_model)
    assert out.shape == (batch, seq, d_model)
    assert out.dtype == jnp.float32
    assert jnp.allclose(out, ref, atol=1e-6, rtol=1e-6)

    print("KERNEL_OK")
</pallas_src>

<mosaic_0001>
module attributes {stable_mosaic.version = 11 : i64} {
  func.func @_embed_gather_kernel(%arg0: i32, %arg1: memref<256xi32, #tpu.memory_space<smem>>, %arg2: memref<512x128xf32, #tpu.memory_space<any>>, %arg3: memref<128x128xf32, #tpu.memory_space<vmem>>, %arg4: memref<128x128xf32, #tpu.memory_space<vmem>>, %arg5: memref<!tpu.dma_semaphore, #tpu.memory_space<semaphore_mem>>) attributes {dimension_semantics = [#tpu.dimension_semantics<parallel>], iteration_bounds = array<i64: 2>, scalar_prefetch = 1 : i64, scratch_operands = 2 : i64, tpu.core_type = #tpu.core_type<tc>, window_params = [{}, {transform_indices = @transform_1, window_bounds = array<i64: 128, 128>}]} {
    %c128_i32 = arith.constant 128 : i32
    %0 = arith.muli %arg0, %c128_i32 : i32
    %c0_i32 = arith.constant 0 : i32
    %c128_i32_0 = arith.constant 128 : i32
    %1 = arith.addi %c0_i32, %c128_i32_0 : i32
    %c1_i32 = arith.constant 1 : i32
    scf.for %arg6 = %c0_i32 to %1 step %c1_i32  : i32 {
      %c1_i32_9 = arith.constant 1 : i32
      %7 = arith.muli %arg6, %c1_i32_9 : i32
      %c0_i32_10 = arith.constant 0 : i32
      %8 = arith.addi %c0_i32_10, %7 : i32
      %9 = arith.addi %0, %8 : i32
      %10 = arith.index_cast %9 : i32 to index
      %11 = memref.load %arg1[%10] : memref<256xi32, #tpu.memory_space<smem>>
      %c0_i32_11 = arith.constant 0 : i32
      %12 = tpu.memref_slice %arg2[%11, %c0_i32_11] : memref<512x128xf32, #tpu.memory_space<any>> -> memref<1x128xf32, #tpu.memory_space<any>>
      %13 = tpu.memref_squeeze %12 : memref<1x128xf32, #tpu.memory_space<any>> -> memref<128xf32, #tpu.memory_space<any>>
      %c0_i32_12 = arith.constant 0 : i32
      %14 = tpu.memref_slice %arg4[%8, %c0_i32_12] : memref<128x128xf32, #tpu.memory_space<vmem>> -> memref<1x128xf32, #tpu.memory_space<vmem>>
      %15 = tpu.memref_squeeze %14 : memref<1x128xf32, #tpu.memory_space<vmem>> -> memref<128xf32, #tpu.memory_space<vmem>>
      tpu.enqueue_dma source(%13 : memref<128xf32, #tpu.memory_space<any>>) target(%15 : memref<128xf32, #tpu.memory_space<vmem>>) target_semaphore(%arg5 : memref<!tpu.dma_semaphore, #tpu.memory_space<semaphore_mem>>)
    }
    %c128_i32_1 = arith.constant 128 : i32
    %c0_i32_2 = arith.constant 0 : i32
    %c128_i32_3 = arith.constant 128 : i32
    %2 = arith.addi %c0_i32_2, %c128_i32_3 : i32
    %c1_i32_4 = arith.constant 1 : i32
    scf.for %arg6 = %c0_i32_2 to %2 step %c1_i32_4  : i32 {
      %c1_i32_9 = arith.constant 1 : i32
      %7 = arith.muli %arg6, %c1_i32_9 : i32
      %c0_i32_10 = arith.constant 0 : i32
      %8 = arith.addi %c0_i32_10, %7 : i32
      %c0_i32_11 = arith.constant 0 : i32
      %c0_i32_12 = arith.constant 0 : i32
      %9 = tpu.memref_slice %arg2[%c0_i32_11, %c0_i32_12] : memref<512x128xf32, #tpu.memory_space<any>> -> memref<1x128xf32, #tpu.memory_space<any>>
      %10 = tpu.memref_squeeze %9 : memref<1x128xf32, #tpu.memory_space<any>> -> memref<128xf32, #tpu.memory_space<any>>
      %c0_i32_13 = arith.constant 0 : i32
      %11 = tpu.memref_slice %arg4[%8, %c0_i32_13] : memref<128x128xf32, #tpu.memory_space<vmem>> -> memref<1x128xf32, #tpu.memory_space<vmem>>
      %12 = tpu.memref_squeeze %11 : memref<1x128xf32, #tpu.memory_space<vmem>> -> memref<128xf32, #tpu.memory_space<vmem>>
      tpu.wait_dma2 semaphore(%arg5 : memref<!tpu.dma_semaphore, #tpu.memory_space<semaphore_mem>>) src(%10 : memref<128xf32, #tpu.memory_space<any>>) dst(%12 : memref<128xf32, #tpu.memory_space<vmem>>)
    }
    %c128_i32_5 = arith.constant 128 : i32
    %c0 = arith.constant 0 : index
    %c0_6 = arith.constant 0 : index
    %3 = vector.load %arg4[%c0, %c0_6] : memref<128x128xf32, #tpu.memory_space<vmem>>, vector<128x128xf32>
    %cst = arith.constant 11.3137083 : f32
    %4 = vector.broadcast %cst : f32 to vector<128x128xf32>
    %5 = arith.mulf %3, %4 : vector<128x128xf32>
    %c0_7 = arith.constant 0 : index
    %c0_8 = arith.constant 0 : index
    %6 = vector.load %arg3[%c0_7, %c0_8] : memref<128x128xf32, #tpu.memory_space<vmem>>, vector<128x128xf32>
    tpu.vector_store %arg3[%c0_7, %c0_8], %5 {strides = array<i32>} : memref<128x128xf32, #tpu.memory_space<vmem>>, vector<128x128xf32>,
    return
  }
  func.func @transform_1(%arg0: i32, %arg1: memref<256xi32, #tpu.memory_space<smem>>) -> (i32, i32) {
    %c0_i32 = arith.constant 0 : i32
    %c0_i32_0 = arith.constant 0 : i32
    return %arg0, %c0_i32 : i32, i32
  }
}

</mosaic_0001>

<bundles_post_ra>
// kernel: tpu_custom_call.1
= control target key start
LH: loop header
LB: loop body
LE: loop exit
PB: predicated region body
PF: predicated region fallthrough
CT: control target
= control target key end

     0   :  { %s391_s12 = smov [#allocation5]   ;;  %s525_s0 = inlined_call_operand.hbm [shape: s32[256], index: 0, kind: input, shape index: {}]   ;;  %s526_s1 = inlined_call_operand.hbm [shape: f32[512,128], index: 1, kind: input, shape index: {}]   ;;  %s527_s2 = inlined_call_operand.hbm [shape: f32[256,128], index: 2, kind: output, shape index: {}]  }
   0x1   :  { %s8_s11 = sshll.u32 %s525_s0, 4  ;;  %s9_s11 = int_to_ptr.hbm [resolvable:$true] %s8_s11 }
   0x2   :  { %11 = dma.hbm_to_smem %s9_s11, 32, %s391_s12, [#allocation4] }
   0x3   :  { %363 = dma.done.wait [#allocation4], 32 }
   0x4   :  { %364 = vsyncadd [#allocation4], 4294967264 }
   0x5   :  { %14 = sfence }
   0x6   :  { %15 = vsyncpa [#allocation7], 0 }
   0x7   :  { %17 = vsyncpa [#allocation7 + $0x1], 0  ;;  %s413_s13 = smov 0   ;;  %s415_s14 = smov 0  }
   0x8   :  { %s417_s15 = smov 0  }
   0x9 LB: > { %s217_s0 = sadd.s32 4294967295, %s381_s15   ;;  %s430_s16 = sadd.s32 1, %s381_s15   ;;  %s381_s15 = sphi %s417_s15, %s532_s15   ;;  %s377_s14 = sphi %s415_s14, %s531_s14   ;;  %s373_s13 = sphi %s413_s13, %s530_s13  }
   0xa   : > { %s26_s17 = ssub.s32 %s381_s15, %s430_s16  ;;  %s29_s18 = sadd.s32 1, %s377_s14 }
   0xb   : > { %p27_p0 = scmp.eq.s32.totalorder %s26_s17, 0  ;;  %p218_p1 = scmp.ne.s32.totalorder %s26_s17, 0 }
   0xc   : > { %p33_p2 = scmp.eq.s32.totalorder %s381_s15, 1  ;;  %p38_p3 = scmp.ne.s32.totalorder %s377_s14, %s373_s13 }
   0xd   : > { %s439_s19 = scalar_select %p27_p0, %s377_s14, %s29_s18  }
   0xe   : > { %p441_p4 = por %p218_p1, %p33_p2  ;;  %p39_p5 = scmp.eq.s32.totalorder %s217_s0, 1 }
   0xf   : > { %p219_p7 = scmp.ge.s32.totalorder %s381_s15, 2 }
  0x10   : > { %p445_p6 = por %p39_p5, %p38_p3  ;;  %s53_s22 = sand.u32 (!%p219_p7), 1, %s377_s14  }
  0x11   : > { %48 = sbr.rel (%p219_p7) target bundleno = 85 (0x55), region = 12  ;;  %s221_s23 = sshll.u32 (!%p219_p7), %s381_s15, 7 }
  0x12   : > { %s220_s24 = sshll.u32 (!%p219_p7), %s53_s22, 7  ;;  %s456_s26 = smov (!%p219_p7), 0  }
  0x13   : > { %s454_s25 = scalar_lea.vmem (!%p219_p7), [#allocation6], %s220_s24 }
  0x16 LB: >> { %s64_s27 = sadd.s32 %s385_s26, %s221_s23  ;;  %s67_s29 = scalar_lea.vmem [#allocation2], %s385_s26  ;;  %s385_s26 = sphi %s456_s26, %s63_s26  }
  0x17   : >> { %s65_s28 = sld [smem:[#allocation5 + %s64_s27]]  ;;  %s77_s30 = sshll.u32 %s67_s29, 4  ;;  %s78_s30 = int_to_ptr.vmem [resolvable:$true] %s77_s30 }
  0x18   : >> { %s295_s11 = scalar_lea.hbm %s526_s1, 512 }
  0x1d   : >> { %s66_s5 = scalar_lea.hbm %s526_s1, %s65_s28 }
  0x1e   : >> { %s75_s6 = sshll.u32 %s66_s5, 4  ;;  %s76_s6 = int_to_ptr.hbm [resolvable:$true] %s75_s6 }
  0x1f   : >> { %s291_s7 = sshra.s32 %s76_s6, 4  ;;  %s292_s7 = int_to_ptr.hbm [resolvable:$true] %s291_s7 }
  0x20   : >> { %s293_s8 = scalar_lea.hbm %s292_s7, 1  ;;  %p296_p9 = scmp.lt.s32.totalorder %s292_s7, %s526_s1 }
  0x21   : >> { %p294_p8 = scmp.ne.s32.totalorder %s292_s7, %s293_s8  ;;  %p297_p10 = scmp.lt.s32.totalorder %s295_s11, %s293_s8 }
  0x23   : >> { %p298_p11 = por %p297_p10, %p296_p9 }
  0x25   : >> { %p299_p12 = pnand %p298_p11, %p294_p8 }
  0x27   : >> { %302 = shalt.err (!%p299_p12)  }
  0x28   : >> { %s303_s17 = sshra.s32 %s78_s30, 4  ;;  %s392_s24 = smov [#allocation2]   ;;  %s304_s17 = int_to_ptr.vmem [resolvable:$true] %s303_s17 }
  0x29   : >> { %s305_s18 = scalar_lea.vmem %s304_s17, 1  ;;  %s307_s27 = scalar_lea.vmem %s392_s24, 128 }
  0x2a   : >> { %p306_p13 = scmp.ne.s32.totalorder %s304_s17, %s305_s18  ;;  %p308_p0 = scmp.lt.s32.totalorder %s304_s17, [#allocation2] }
  0x2b   : >> { %p309_p1 = scmp.lt.s32.totalorder %s307_s27, %s305_s18 }
  0x2d   : >> { %p310_p2 = por %p309_p1, %p308_p0 }
  0x2f   : >> { %p311_p3 = pnand %p310_p2, %p306_p13 }
  0x31   : >> { %314 = shalt.err (!%p311_p3)  }
  0x32   : >> { %80 = dma.hbm_to_vmem [thread:$0]  %s76_s6, 16, %s78_s30, [#allocation3] }
  0x33   : >> { %s63_s26 = sadd.s32 1, %s385_s26  }
  0x34   : >> { %p60_p5 = scmp.ge.s32.totalorder %s63_s26, 128  }
  0x35   : > { %s387_s28 = smov (%p60_p5), 0  }
  0x36   : > { %62 = sbr.rel (!%p60_p5) target bundleno = 22 (0x16), region = 64 }
  0x3b LB: >> { %365 = dma.done.wait [#allocation3], 16  ;;  %s389_s28 = sphi %s387_s28, %s86_s28  }
  0x3c   : >> { %366 = vsyncadd [#allocation3], 4294967280  ;;  %s86_s28 = sadd.s32 1, %s389_s28  }
  0x3d   : >> { %p83_p7 = scmp.ge.s32.totalorder %s86_s28, 128  }
  0x3e   : > { %v89_v0 = vld [vmem:[#allocation2] sm:$0xff] (%p83_p7)  ;;  %v90_v1 = vld [vmem:[#allocation2 + $0x8] sm:$0xff] (%p83_p7)  ;;  %v91_v2 = vld [vmem:[#allocation2 + $0x10] sm:$0xff] (%p83_p7)  ;;  %s149_s30 = scalar_lea.hbm (%p83_p7), %s527_s2, %s221_s23  ;;  %s150_s3 = sshll.u32 (%p83_p7), %s454_s25, 4  ;;  %s151_s3 = int_to_ptr.vmem [resolvable:$true] %s150_s3 }
  0x3f   : > { %85 = sbr.rel (!%p83_p7) target bundleno = 59 (0x3b), region = 75  ;;  %v105_v3 = vmul.f32 (%p83_p7), 11.313708, %v89_v0  ;;  %v106_v4 = vmul.f32 (%p83_p7), 11.313708, %v90_v1  ;;  %v92_v6 = vld [vmem:[#allocation2 + $0x18] sm:$0xff] (%p83_p7) }
  0x40   : > { %v107_v5 = vmul.f32 (%p83_p7), 11.313708, %v91_v2  ;;  %v93_v7 = vld [vmem:[#allocation2 + $0x20] sm:$0xff] (%p83_p7)  ;;  %v94_v8 = vld [vmem:[#allocation2 + $0x28] sm:$0xff] (%p83_p7)  ;;  %v108_v9 = vmul.f32 (%p83_p7), 11.313708, %v92_v6 }
  0x41   : > { %121 = vst [vmem:[%s454_s25] sm:$0xff] (%p83_p7), %v105_v3  ;;  %v109_v10 = vmul.f32 (%p83_p7), 11.313708, %v93_v7  ;;  %v110_v11 = vmul.f32 (%p83_p7), 11.313708, %v94_v8  ;;  %v95_v12 = vld [vmem:[#allocation2 + $0x30] sm:$0xff] (%p83_p7)  ;;  %v96_v13 = vld [vmem:[#allocation2 + $0x38] sm:$0xff] (%p83_p7) }
  0x42   : > { %122 = vst [vmem:[%s454_s25 + $0x8] sm:$0xff] (%p83_p7), %v106_v4  ;;  %v97_v14 = vld [vmem:[#allocation2 + $0x40] sm:$0xff] (%p83_p7)  ;;  %v111_v15 = vmul.f32 (%p83_p7), 11.313708, %v95_v12  ;;  %v98_v16 = vld [vmem:[#allocation2 + $0x48] sm:$0xff] (%p83_p7)  ;;  %v99_v18 = vld [vmem:[#allocation2 + $0x50] sm:$0xff] (%p83_p7) }
  0x43   : > { %123 = vst [vmem:[%s454_s25 + $0x10] sm:$0xff] (%p83_p7), %v107_v5  ;;  %v112_v17 = vmul.f32 (%p83_p7), 11.313708, %v96_v13  ;;  %v113_v19 = vmul.f32 (%p83_p7), 11.313708, %v97_v14  ;;  %v100_v20 = vld [vmem:[#allocation2 + $0x58] sm:$0xff] (%p83_p7) }
  0x44   : > { %124 = vst [vmem:[%s454_s25 + $0x18] sm:$0xff] %v108_v9  ;;  %v114_v21 = vmul.f32 11.313708, %v98_v16  ;;  %v101_v22 = vld [vmem:[#allocation2 + $0x60] sm:$0xff]  ;;  %v115_v23 = vmul.f32 11.313708, %v99_v18 }
  0x45   : > { %125 = vst [vmem:[%s454_s25 + $0x20] sm:$0xff] %v109_v10  ;;  %v102_v24 = vld [vmem:[#allocation2 + $0x68] sm:$0xff]  ;;  %v116_v25 = vmul.f32 11.313708, %v100_v20  ;;  %v103_v26 = vld [vmem:[#allocation2 + $0x70] sm:$0xff]  ;;  %v104_v28 = vld [vmem:[#allocation2 + $0x78] sm:$0xff] }
  0x46   : > { %126 = vst [vmem:[%s454_s25 + $0x28] sm:$0xff] %v110_v11  ;;  %v117_v27 = vmul.f32 11.313708, %v101_v22  ;;  %v118_v29 = vmul.f32 11.313708, %v102_v24  ;;  %s152_s4 = sshll.u32 %s149_s30, 4  ;;  %s153_s4 = int_to_ptr.hbm [resolvable:$true] %s152_s4 }
  0x47   : > { %127 = vst [vmem:[%s454_s25 + $0x30] sm:$0xff] %v111_v15  ;;  %v119_v30 = vmul.f32 11.313708, %v103_v26  ;;  %v120_v31 = vmul.f32 11.313708, %v104_v28  ;;  %s138_s23 = scalar_lea.sflag [#allocation7], %s53_s22 }
  0x48   : > { %128 = vst [vmem:[%s454_s25 + $0x38] sm:$0xff] %v112_v17  ;;  %s329_s5 = sshra.s32 %s153_s4, 4  ;;  %s335_s9 = scalar_lea.hbm %s527_s2, 256  ;;  %s330_s5 = int_to_ptr.hbm [resolvable:$true] %s329_s5 }
  0x49   : > { %129 = vst [vmem:[%s454_s25 + $0x40] sm:$0xff] %v113_v19  ;;  %s331_s6 = scalar_lea.hbm %s330_s5, 128  ;;  %p336_p11 = scmp.lt.s32.totalorder %s330_s5, %s527_s2 }
  0x4a   : > { %130 = vst [vmem:[%s454_s25 + $0x48] sm:$0xff] %v114_v21  ;;  %p332_p8 = scmp.ne.s32.totalorder %s330_s5, %s331_s6  ;;  %p337_p12 = scmp.lt.s32.totalorder %s335_s9, %s331_s6 }
  0x4b   : > { %131 = vst [vmem:[%s454_s25 + $0x50] sm:$0xff] %v115_v23 }
  0x4c   : > { %132 = vst [vmem:[%s454_s25 + $0x58] sm:$0xff] %v116_v25  ;;  %p333_p9 = pnand %p332_p8, %p441_p4  ;;  %p338_p13 = por %p337_p12, %p336_p11 }
  0x4d   : > { %133 = vst [vmem:[%s454_s25 + $0x60] sm:$0xff] %v117_v27 }
  0x4e   : > { %134 = vst [vmem:[%s454_s25 + $0x68] sm:$0xff] %v118_v29  ;;  %p334_p10 = pneg %p333_p9 }
  0x4f   : > { %135 = vst [vmem:[%s454_s25 + $0x70] sm:$0xff] %v119_v30 }
  0x50   : > { %136 = vst [vmem:[%s454_s25 + $0x78] sm:$0xff] %v120_v31  ;;  %p339_p0 = pnand %p338_p13, %p334_p10 }
  0x52   : > { %342 = shalt.err (!%p339_p0)
}
  0x53   : > { %s393_s22 = smov 128   ;;  %s394_s25 = smov 8  }
  0x54   : > { %229 = dma.vmem_to_hbm [thread:$0]  (%p441_p4), %s151_s3, 2048, %s153_s4, %s138_s23, %s393_s22, %s393_s22, %s394_s25  }
  0x55 PF: > { %p235_p1 = scmp.ge.s32.totalorder %s381_s15, 1  ;;  %s167_s12 = sand.u32 1, %s373_s13  }
  0x56   : > { %s168_s0 = scalar_lea.sflag [#allocation7], %s167_s12 }
  0x57   : > { %p232_p2 = pnand %p235_p1, %p445_p6 }
  0x59   : > { %p233_p3 = pneg %p232_p2 }
  0x5b   : > { %368 = dma.done.wait (%p233_p3), %s168_s0, 2048  }
  0x5c   : > { %370 = vsyncadd (%p233_p3), %s168_s0, 4294965248  ;;  %p20_p5 = scmp.ge.s32.totalorder %s430_s16, 3   ;;  %s530_s13 = smov %s377_s14 }
  0x5d   : > { %s531_s14 = smov %s439_s19  ;;  %s532_s15 = smov %s430_s16 }
  0x5e   :  { %22 = sbr.rel (!%p20_p5) target bundleno = 9 (0x9), region = 86 }
  0x63   :  { %174 = vsyncpa [#allocation7], 1 }
  0x64   :  { %176 = vsyncpa [#allocation7 + $0x1], 1 }
  0x65   :  { %177 = vsyncmov [#allocation3] }
  0x68   :  { %s178_s15 = vpop.sfrf %177 }
  0x69   :  { %p227_p4 = scmp.ne.s32.totalorder %s178_s15, 0 }
  0x6b   :  { %182 = shalt.err (%p227_p4)  }

</bundles_post_ra>
